<compile_context>
chip_gen: v7x
topology: tpu7x:2x2x1
jax: 0.10.0
libtpu: 0.0.40
codegen_flags: <defaults>
</compile_context>

<pallas_src>
import jax
import jax.numpy as jnp
from jax.experimental import pallas as pl
from jax.experimental.pallas import tpu as pltpu

IN_DIM = 64 * 7 * 7   # 3136
HID = 128
OUT = 10


def _round_up(x, m):
    return ((x + m - 1) // m) * m


IN_PAD = _round_up(IN_DIM, 128)   # 3200 = 25 * 128
OUT_PAD = _round_up(OUT, 128)     # 128 (lane-dense output)


def fcnet_kernel(x_ref, w1_ref, b1_ref, w2_ref, b2_ref, o_ref):
    # fc1: (TB, IN_PAD) @ (IN_PAD, HID) -> f32 accumulation on the MXU.
    h = jnp.dot(x_ref[...], w1_ref[...], preferred_element_type=jnp.float32)
    # bias + ReLU in f32 (VPU).
    h = jnp.maximum(h + b1_ref[...], 0.0)
    # fc2: (TB, HID) @ (HID, OUT_PAD); lane-dense 128-wide output.
    out = jnp.dot(h.astype(w2_ref.dtype), w2_ref[...],
                  preferred_element_type=jnp.float32)
    o_ref[...] = (out + b2_ref[...]).astype(o_ref.dtype)


def fcnet_forward(x, w1_t, b1, w2_t, b2, *, max_tb=256,
                  compute_dtype=jnp.bfloat16):
    """x: (B, 3136) f32; w1_t: (3136, 128); b1: (1, 128);
       w2_t: (128, 10); b2: (1, 10).  Returns (B, 10) f32."""
    B = x.shape[0]

    # Batch tile: multiple of 8 sublanes, MXU-friendly, capped for VMEM.
    TB = min(max_tb, _round_up(B, 8))
    Bp = _round_up(B, TB)

    # Zero-pad (exact): batch -> Bp, K -> 3200, fc2 out -> 128 lanes.
    x_p = jnp.pad(x, ((0, Bp - B), (0, IN_PAD - IN_DIM))).astype(compute_dtype)
    w1_p = jnp.pad(w1_t, ((0, IN_PAD - IN_DIM), (0, 0))).astype(compute_dtype)
    w2_p = jnp.pad(w2_t, ((0, 0), (0, OUT_PAD - OUT))).astype(compute_dtype)
    b1_f = b1.astype(jnp.float32)
    b2_p = jnp.pad(b2, ((0, 0), (0, OUT_PAD - OUT))).astype(jnp.float32)

    grid = (pl.cdiv(Bp, TB),)

    flops = 2 * Bp * IN_PAD * HID + 2 * Bp * HID * OUT_PAD
    bytes_accessed = (x_p.size * x_p.dtype.itemsize
                      + w1_p.size * w1_p.dtype.itemsize
                      + w2_p.size * w2_p.dtype.itemsize
                      + b1_f.size * 4 + b2_p.size * 4
                      + Bp * OUT_PAD * 4)

    out_p = pl.pallas_call(
        fcnet_kernel,
        out_shape=jax.ShapeDtypeStruct((Bp, OUT_PAD), jnp.float32),
        grid=grid,
        in_specs=[
            # x: tiled along batch -> double-buffered per grid step.
            pl.BlockSpec((TB, IN_PAD), lambda i: (i, 0)),
            # Weights / biases: constant block index -> resident in VMEM.
            pl.BlockSpec((IN_PAD, HID), lambda i: (0, 0)),
            pl.BlockSpec((1, HID), lambda i: (0, 0)),
            pl.BlockSpec((HID, OUT_PAD), lambda i: (0, 0)),
            pl.BlockSpec((1, OUT_PAD), lambda i: (0, 0)),
        ],
        out_specs=pl.BlockSpec((TB, OUT_PAD), lambda i: (i, 0)),
        compiler_params=pltpu.CompilerParams(
            dimension_semantics=("parallel",)),
        cost_estimate=pl.CostEstimate(
            flops=flops, transcendentals=0, bytes_accessed=bytes_accessed),
    )(x_p, w1_p, b1_f, w2_p, b2_p)

    # Strip batch / lane padding.
    return out_p[:B, :OUT]


def init_params(key):
    """Deterministic init matching nn.Linear shapes (uniform +/- 1/sqrt(fan_in))."""
    k1, k2, k3, k4 = jax.random.split(key, 4)
    bound1 = 1.0 / jnp.sqrt(IN_DIM)
    bound2 = 1.0 / jnp.sqrt(HID)
    # PyTorch stores weight as (out, in); we keep the transposed (in, out).
    w1_t = jax.random.uniform(k1, (IN_DIM, HID), jnp.float32, -bound1, bound1)
    b1 = jax.random.uniform(k2, (1, HID), jnp.float32, -bound1, bound1)
    w2_t = jax.random.uniform(k3, (HID, OUT), jnp.float32, -bound2, bound2)
    b2 = jax.random.uniform(k4, (1, OUT), jnp.float32, -bound2, bound2)
    return w1_t, b1, w2_t, b2


if __name__ == "__main__":
    key = jax.random.PRNGKey(0)
    kx, kp = jax.random.split(key)
    B = 2
    x = jax.random.normal(kx, (B, IN_DIM), jnp.float32)
    w1_t, b1, w2_t, b2 = init_params(kp)

    out = fcnet_forward(x, w1_t, b1, w2_t, b2)
    out = jax.block_until_ready(out)

    # Pure-JAX f32 reference (same math as the PyTorch forward).
    ref = jnp.maximum(x @ w1_t + b1, 0.0) @ w2_t + b2
    assert out.shape == (B, OUT)
    # bf16 inputs with f32 accumulation -> ~0.5% relative error vs f32 ref.
    assert jnp.allclose(out, ref, atol=2e-2, rtol=2e-2)

    print("KERNEL_OK")
</pallas_src>

<mosaic_0001>
module attributes {stable_mosaic.version = 11 : i64} {
  func.func @fcnet_kernel(%arg0: i32, %arg1: memref<8x3200xbf16, #tpu.memory_space<vmem>>, %arg2: memref<3200x128xbf16, #tpu.memory_space<vmem>>, %arg3: memref<1x128xf32, #tpu.memory_space<vmem>>, %arg4: memref<128x128xbf16, #tpu.memory_space<vmem>>, %arg5: memref<1x128xf32, #tpu.memory_space<vmem>>, %arg6: memref<8x128xf32, #tpu.memory_space<vmem>>) attributes {dimension_semantics = [#tpu.dimension_semantics<parallel>], iteration_bounds = array<i64: 1>, scalar_prefetch = 0 : i64, scratch_operands = 0 : i64, tpu.core_type = #tpu.core_type<tc>, window_params = [{transform_indices = @transform_0, window_bounds = array<i64: 8, 3200>}, {pipeline_mode = #tpu.pipeline_mode<synchronous>, transform_indices = @transform_1, window_bounds = array<i64: 3200, 128>}, {pipeline_mode = #tpu.pipeline_mode<synchronous>, transform_indices = @transform_2, window_bounds = array<i64: 1, 128>}, {pipeline_mode = #tpu.pipeline_mode<synchronous>, transform_indices = @transform_3, window_bounds = array<i64: 128, 128>}, {pipeline_mode = #tpu.pipeline_mode<synchronous>, transform_indices = @transform_4, window_bounds = array<i64: 1, 128>}, {transform_indices = @transform_5, window_bounds = array<i64: 8, 128>}]} {
    %c0 = arith.constant 0 : index
    %c0_0 = arith.constant 0 : index
    %0 = vector.load %arg1[%c0, %c0_0] : memref<8x3200xbf16, #tpu.memory_space<vmem>>, vector<8x3200xbf16>
    %c0_1 = arith.constant 0 : index
    %c0_2 = arith.constant 0 : index
    %1 = vector.load %arg2[%c0_1, %c0_2] : memref<3200x128xbf16, #tpu.memory_space<vmem>>, vector<3200x128xbf16>
    %cst = arith.constant dense<0.000000e+00> : vector<8x128xf32>
    %2 = tpu.matmul %0, %1, %cst {dimension_numbers = #tpu.dot_dimension_numbers<[1], [0], [0], [1], [0, 0, 1, 1], [], []>} : vector<8x3200xbf16>, vector<3200x128xbf16>, vector<8x128xf32> -> vector<8x128xf32>
    %c0_3 = arith.constant 0 : index
    %c0_4 = arith.constant 0 : index
    %3 = vector.load %arg3[%c0_3, %c0_4] : memref<1x128xf32, #tpu.memory_space<vmem>>, vector<1x128xf32>
    %4 = vector.broadcast %3 : vector<1x128xf32> to vector<8x128xf32>
    %5 = arith.addf %2, %4 : vector<8x128xf32>
    %cst_5 = arith.constant 0.000000e+00 : f32
    %6 = vector.broadcast %cst_5 : f32 to vector<8x128xf32>
    %7 = arith.maximumf %5, %6 : vector<8x128xf32>
    %8 = arith.truncf %7 : vector<8x128xf32> to vector<8x128xbf16>
    %c0_6 = arith.constant 0 : index
    %c0_7 = arith.constant 0 : index
    %9 = vector.load %arg4[%c0_6, %c0_7] : memref<128x128xbf16, #tpu.memory_space<vmem>>, vector<128x128xbf16>
    %cst_8 = arith.constant dense<0.000000e+00> : vector<8x128xf32>
    %10 = tpu.matmul %8, %9, %cst_8 {dimension_numbers = #tpu.dot_dimension_numbers<[1], [0], [0], [1], [0, 0, 1, 1], [], []>} : vector<8x128xbf16>, vector<128x128xbf16>, vector<8x128xf32> -> vector<8x128xf32>
    %c0_9 = arith.constant 0 : index
    %c0_10 = arith.constant 0 : index
    %11 = vector.load %arg5[%c0_9, %c0_10] : memref<1x128xf32, #tpu.memory_space<vmem>>, vector<1x128xf32>
    %12 = vector.broadcast %11 : vector<1x128xf32> to vector<8x128xf32>
    %13 = arith.addf %10, %12 : vector<8x128xf32>
    %c0_11 = arith.constant 0 : index
    %c0_12 = arith.constant 0 : index
    %14 = vector.load %arg6[%c0_11, %c0_12] : memref<8x128xf32, #tpu.memory_space<vmem>>, vector<8x128xf32>
    tpu.vector_store %arg6[%c0_11, %c0_12], %13 {strides = array<i32>} : memref<8x128xf32, #tpu.memory_space<vmem>>, vector<8x128xf32>,
    return
  }
  func.func @transform_0(%arg0: i32) -> (i32, i32) {
    %c0_i32 = arith.constant 0 : i32
    %c0_i32_0 = arith.constant 0 : i32
    return %arg0, %c0_i32 : i32, i32
  }
  func.func @transform_1(%arg0: i32) -> (i32, i32) {
    %c0_i32 = arith.constant 0 : i32
    %c0_i32_0 = arith.constant 0 : i32
    %c0_i32_1 = arith.constant 0 : i32
    return %c0_i32, %c0_i32_0 : i32, i32
  }
  func.func @transform_2(%arg0: i32) -> (i32, i32) {
    %c0_i32 = arith.constant 0 : i32
    %c0_i32_0 = arith.constant 0 : i32
    %c0_i32_1 = arith.constant 0 : i32
    return %c0_i32, %c0_i32_0 : i32, i32
  }
  func.func @transform_3(%arg0: i32) -> (i32, i32) {
    %c0_i32 = arith.constant 0 : i32
    %c0_i32_0 = arith.constant 0 : i32
    %c0_i32_1 = arith.constant 0 : i32
    return %c0_i32, %c0_i32_0 : i32, i32
  }
  func.func @transform_4(%arg0: i32) -> (i32, i32) {
    %c0_i32 = arith.constant 0 : i32
    %c0_i32_0 = arith.constant 0 : i32
    %c0_i32_1 = arith.constant 0 : i32
    return %c0_i32, %c0_i32_0 : i32, i32
  }
  func.func @transform_5(%arg0: i32) -> (i32, i32) {
    %c0_i32 = arith.constant 0 : i32
    %c0_i32_0 = arith.constant 0 : i32
    return %arg0, %c0_i32 : i32, i32
  }
}

</mosaic_0001>

<bundles_post_ra>
// kernel: tpu_custom_call.1
= control target key start
LH: loop header
LB: loop body
LE: loop exit
PB: predicated region body
PF: predicated region fallthrough
CT: control target
= control target key end

     0   :  { %10 = vsyncpa [#allocation3], 0  ;;  %s3427_s0 = inlined_call_operand.hbm [shape: bf16[8,3200], index: 0, kind: input, shape index: {}]   ;;  %s3428_s1 = inlined_call_operand.hbm [shape: bf16[3200,128], index: 1, kind: input, shape index: {}]   ;;  %s3429_s2 = inlined_call_operand.vmem [shape: f32[1,128], index: 2, kind: input, shape index: {}]   ;;  %s3430_s3 = inlined_call_operand.hbm [shape: bf16[128,128], index: 3, kind: input, shape index: {}]   ;;  %s3431_s4 = inlined_call_operand.vmem [shape: f32[1,128], index: 4, kind: input, shape index: {}]   ;;  %s3432_s5 = inlined_call_operand.hbm [shape: f32[8,128], index: 5, kind: output, shape index: {}]  }
   0x1   :  { %11 = vsyncpa [#allocation6], 0 }
   0x2   :  { %12 = vsyncpa [#allocation4], 0  ;;  %s3311_s18 = smov [#allocation5]   ;;  %s3217_s22 = scalar_lea.hbm %s3428_s1, 25600 }
   0x3   :  { %s28_s19 = sshll.u32 %s3311_s18, 4  ;;  %p3218_p0 = scmp.ne.s32.totalorder %s3428_s1, %s3217_s22  ;;  %s29_s19 = int_to_ptr.vmem [resolvable:$true] %s28_s19 }
   0x4   :  { %p3221_p1 = scmp.lt.u32.totalorder %s3217_s22, %s3428_s1 }
   0x6   :  { %p3223_p2 = pnand %p3221_p1, %p3218_p0 }
   0x8   :  { %3226 = shalt.err (!%p3223_p2)
}
   0x9   :  { %s3227_s27 = scalar_lea.vmem %s29_s19, 25600  ;;  %p3232_p4 = scmp.lt.s32.totalorder %s29_s19, %s29_s19 }
   0xa   :  { %p3228_p3 = scmp.ne.s32.totalorder %s29_s19, %s3227_s27  ;;  %p3233_p5 = scmp.lt.s32.totalorder %s3227_s27, %s3227_s27 }
   0xc   :  { %p3234_p6 = por %p3233_p5, %p3232_p4 }
   0xe   :  { %p3235_p7 = pnand %p3234_p6, %p3228_p3 }
  0x10   :  { %3238 = shalt.err (!%p3235_p7)
}
  0x11   :  { %s3312_s28 = smov 64   ;;  %s3313_s29 = smov 4  }
  0x12   :  { %34 = dma.hbm_to_vmem [thread:$0]  %s3428_s1, 25600, %s29_s19, [#allocation6], %s3312_s28, %s3312_s28, %s3313_s29  }
  0x13   :  { %s3314_s7 = smov [#allocation2]   ;;  %s3315_s9 = smov [#allocation7]  }
  0x14   :  { %s19_s8 = sshll.u32 %s3314_s7, 4  ;;  %s42_s10 = sshll.u32 %s3315_s9, 4  ;;  %s20_s8 = int_to_ptr.vmem [resolvable:$true] %s19_s8  ;;  %s43_s10 = int_to_ptr.vmem [resolvable:$true] %s42_s10 }
  0x15   :  { %s3239_s13 = scalar_lea.hbm %s3427_s0, 1600 }
  0x16   :  { %p3240_p8 = scmp.ne.s32.totalorder %s3427_s0, %s3239_s13  ;;  %p3243_p9 = scmp.lt.u32.totalorder %s3239_s13, %s3427_s0 }
  0x18   :  { %p3245_p10 = pnand %p3243_p9, %p3240_p8 }
  0x1a   :  { %3248 = shalt.err (!%p3245_p10)
}
  0x1b   :  { %s3249_s1 = scalar_lea.vmem %s20_s8, 1600  ;;  %p3254_p12 = scmp.lt.s32.totalorder %s20_s8, %s20_s8 }
  0x1c   :  { %p3250_p11 = scmp.ne.s32.totalorder %s20_s8, %s3249_s1  ;;  %p3255_p13 = scmp.lt.s32.totalorder %s3249_s1, %s3249_s1 }
  0x1e   :  { %p3256_p0 = por %p3255_p13, %p3254_p12 }
  0x20   :  { %p3257_p1 = pnand %p3256_p0, %p3250_p11 }
  0x22   :  { %3260 = shalt.err (!%p3257_p1)
}
  0x23   :  { %22 = dma.hbm_to_vmem [thread:$0]  %s3427_s0, 1600, %s20_s8, [#allocation3]  }
  0x24   :  { %s3261_s22 = scalar_lea.hbm %s3430_s3, 1024 }
  0x25   :  { %p3262_p2 = scmp.ne.s32.totalorder %s3430_s3, %s3261_s22  ;;  %p3265_p3 = scmp.lt.u32.totalorder %s3261_s22, %s3430_s3 }
  0x27   :  { %p3267_p4 = pnand %p3265_p3, %p3262_p2 }
  0x29   :  { %3270 = shalt.err (!%p3267_p4)
}
  0x2a   :  { %s3271_s27 = scalar_lea.vmem %s43_s10, 1024  ;;  %p3276_p6 = scmp.lt.s32.totalorder %s43_s10, %s43_s10 }
  0x2b   :  { %p3272_p5 = scmp.ne.s32.totalorder %s43_s10, %s3271_s27  ;;  %p3277_p7 = scmp.lt.s32.totalorder %s3271_s27, %s3271_s27 }
  0x2d   :  { %p3278_p8 = por %p3277_p7, %p3276_p6 }
  0x2f   :  { %p3279_p9 = pnand %p3278_p8, %p3272_p5 }
  0x31   :  { %3282 = shalt.err (!%p3279_p9)
}
  0x32   :  { %48 = dma.hbm_to_vmem [thread:$0]  %s3430_s3, 1024, %s43_s10, [#allocation6], %s3312_s28, %s3312_s28, %s3313_s29  }
  0x33   :  { %3305 = dma.done.wait [#allocation3], 1600  }
  0x34   :  { %3306 = vsyncadd [#allocation3], 4294965696 }
  0x35   :  { %3307 = dma.done.wait [#allocation6], 26624  }
  0x36   :  { %3308 = vsyncadd [#allocation6], 4294940672  ;;  %v2984_v0 = vld [vmem:[#allocation5 + $0x40] sm:$0xff]   ;;  %v2988_v4 = vld [vmem:[#allocation5 + $0x48] sm:$0xff]   ;;  %vm3317_vm0 = vmmov 0   ;;  %s3318_s6 = smov [#allocation8]  }
  0x37   :  { %v2985_v1 = vld [vmem:[#allocation5] sm:$0xff]   ;;  %2654 = vmatprep.subr.bf16.mxu0 %v2984_v0  ;;  %v2989_v5 = vld [vmem:[#allocation5 + $0x8] sm:$0xff]   ;;  %v2992_v8 = vld [vmem:[#allocation5 + $0x50] sm:$0xff]   ;;  %s2409_s7 = sshll.u32 %s3318_s6, 4  ;;  %s2410_s7 = int_to_ptr.vmem [resolvable:$true] %s2409_s7 }
  0x38   :  { %v2986_v2 = vld [vmem:[#allocation5 + $0xc0] sm:$0xff]   ;;  %2655 = vmatpush3.bf16.msra.mxu0 %v2985_v1  ;;  %v2990_v6 = vld [vmem:[#allocation5 + $0xc8] sm:$0xff]   ;;  %v2993_v9 = vld [vmem:[#allocation5 + $0x10] sm:$0xff]   ;;  %s3283_s8 = scalar_lea.vmem %s2410_s7, 128  ;;  %p3288_p11 = scmp.lt.s32.totalorder %s2410_s7, %s2410_s7 }
  0x39   :  { %v2987_v3 = vld [vmem:[#allocation5 + $0x80] sm:$0xff]   ;;  %2676 = vmatprep.subr.bf16.mxu1 %v2986_v2  ;;  %2656 = vmatprep.subr.bf16.mxu0 %v2988_v4  ;;  %v2991_v7 = vld [vmem:[#allocation5 + $0x88] sm:$0xff]   ;;  %v2994_v10 = vld [vmem:[#allocation5 + $0xd0] sm:$0xff]   ;;  %p3284_p10 = scmp.ne.s32.totalorder %s2410_s7, %s3283_s8  ;;  %p3289_p12 = scmp.lt.s32.totalorder %s3283_s8, %s3283_s8 }
  0x3a   :  { %2677 = vmatpush3.bf16.msra.mxu1 %v2987_v3  ;;  %v2995_v11 = vld [vmem:[#allocation5 + $0x90] sm:$0xff]   ;;  %v2996_v12 = vld [vmem:[#allocation5 + $0x58] sm:$0xff]   ;;  %v3000_v16 = vld [vmem:[#allocation5 + $0x60] sm:$0xff]  }
  0x3b   :  { %2678 = vmatprep.subr.bf16.mxu1 %v2990_v6  ;;  %v2997_v13 = vld [vmem:[#allocation5 + $0x18] sm:$0xff]   ;;  %v3001_v17 = vld [vmem:[#allocation5 + $0x20] sm:$0xff]   ;;  %v3004_v20 = vld [vmem:[#allocation5 + $0x68] sm:$0xff]   ;;  %p3290_p13 = por %p3289_p12, %p3288_p11 }
  0x3c   :  { %2657 = vmatpush3.bf16.msra.mxu0 %v2989_v5  ;;  %v2998_v14 = vld [vmem:[#allocation5 + $0xd8] sm:$0xff]   ;;  %v3002_v18 = vld [vmem:[#allocation5 + $0xe0] sm:$0xff]   ;;  %v3005_v21 = vld [vmem:[#allocation5 + $0x28] sm:$0xff]  }
  0x3d   :  { %2658 = vmatprep.subr.bf16.mxu0 %v2992_v8  ;;  %v2999_v15 = vld [vmem:[#allocation5 + $0x98] sm:$0xff]   ;;  %v3003_v19 = vld [vmem:[#allocation5 + $0xa0] sm:$0xff]   ;;  %v3006_v22 = vld [vmem:[#allocation5 + $0xe8] sm:$0xff]   ;;  %p3291_p0 = pnand %p3290_p13, %p3284_p10 }
  0x3e   :  { %2679 = vmatpush3.bf16.msra.mxu1 %v2991_v7  ;;  %v3007_v23 = vld [vmem:[#allocation5 + $0xa8] sm:$0xff]   ;;  %v3008_v24 = vld [vmem:[#allocation5 + $0x70] sm:$0xff]   ;;  %v3012_v28 = vld [vmem:[#allocation5 + $0x78] sm:$0xff]  }
  0x3f   :  { %2680 = vmatprep.subr.bf16.mxu1 %v2994_v10  ;;  %v3009_v25 = vld [vmem:[#allocation5 + $0x30] sm:$0xff]   ;;  %v3013_v29 = vld [vmem:[#allocation5 + $0x38] sm:$0xff]   ;;  %v3018_v35 = vld [vmem:[#allocation5 + $0x140] sm:$0xff]  }
  0x40   :  { %2659 = vmatpush3.bf16.msra.mxu0 %v2993_v9  ;;  %v3010_v26 = vld [vmem:[#allocation5 + $0xf0] sm:$0xff]   ;;  %v3014_v30 = vld [vmem:[#allocation5 + $0xf8] sm:$0xff]   ;;  %v62_v36 = vld [vmem:[#allocation2 + $0x8] sm:$0xff] }
  0x41   :  { %2660 = vmatprep.subr.bf16.mxu0 %v2996_v12  ;;  %v3011_v27 = vld [vmem:[#allocation5 + $0xb0] sm:$0xff]   ;;  %v61_v31 = vld [vmem:[#allocation2] sm:$0xff]  ;;  %v2422_v37 = vcombine.low %v62_v36, %v62_v36  ;;  %v2423_v38 = vcombine.high %v62_v36, %v62_v36  ;;  %v3024_v42 = vld [vmem:[#allocation5 + $0x148] sm:$0xff]  }
  0x42   :  { %2681 = vmatpush3.bf16.msra.mxu1 %v2995_v11  ;;  %v2420_v32 = vcombine.low %v61_v31, %v61_v31  ;;  %v2421_v33 = vcombine.high %v61_v31, %v61_v31  ;;  %v3017_v34 = vld [vmem:[#allocation5 + $0xb8] sm:$0xff]   ;;  %v3021_v39 = vld [vmem:[#allocation5 + $0x100] sm:$0xff]   ;;  %v3025_v43 = vld [vmem:[#allocation5 + $0x108] sm:$0xff]  }
  0x43   :  { %2682 = vmatprep.subr.bf16.mxu1 %v2998_v14  ;;  %v3022_v40 = vld [vmem:[#allocation5 + $0x1c0] sm:$0xff]   ;;  %1841 = vmatprep.mubr.bf16.mxu1 %v2423_v38  ;;  %v3026_v44 = vld [vmem:[#allocation5 + $0x1c8] sm:$0xff]   ;;  %v3028_v46 = vld [vmem:[#allocation5 + $0x150] sm:$0xff]  }
  0x44   :  { %2661 = vmatpush3.bf16.msra.mxu0 %v2997_v13  ;;  %1801 = vmatprep.mubr.bf16.mxu0 %v2421_v33  ;;  %v3023_v41 = vld [vmem:[#allocation5 + $0x180] sm:$0xff]   ;;  %v3027_v45 = vld [vmem:[#allocation5 + $0x188] sm:$0xff]   ;;  %v3029_v47 = vld [vmem:[#allocation5 + $0x110] sm:$0xff]  }
  0x45   :  { %2662 = vmatprep.subr.bf16.mxu0 %v3000_v16  ;;  %v3030_v48 = vld [vmem:[#allocation5 + $0x1d0] sm:$0xff]   ;;  %v3032_v50 = vld [vmem:[#allocation5 + $0x158] sm:$0xff]   ;;  %v3036_v54 = vld [vmem:[#allocation5 + $0x160] sm:$0xff]  }
  0x46   :  { %2683 = vmatpush3.bf16.msra.mxu1 %v2999_v15  ;;  %v3031_v49 = vld [vmem:[#allocation5 + $0x190] sm:$0xff]   ;;  %v3033_v51 = vld [vmem:[#allocation5 + $0x118] sm:$0xff]   ;;  %v3037_v55 = vld [vmem:[#allocation5 + $0x120] sm:$0xff]  }
  0x47   :  { %2684 = vmatprep.subr.bf16.mxu1 %v3002_v18  ;;  %v3034_v52 = vld [vmem:[#allocation5 + $0x1d8] sm:$0xff]   ;;  %v3038_v56 = vld [vmem:[#allocation5 + $0x1e0] sm:$0xff]   ;;  %v3040_v58 = vld [vmem:[#allocation5 + $0x168] sm:$0xff]  }
  0x48   :  { %2663 = vmatpush3.bf16.msra.mxu0 %v3001_v17  ;;  %v3035_v53 = vld [vmem:[#allocation5 + $0x198] sm:$0xff]   ;;  %v3039_v57 = vld [vmem:[#allocation5 + $0x1a0] sm:$0xff]   ;;  %v3041_v59 = vld [vmem:[#allocation5 + $0x128] sm:$0xff]  }
  0x49   :  { %2664 = vmatprep.subr.bf16.mxu0 %v3004_v20  ;;  %v3042_v60 = vld [vmem:[#allocation5 + $0x1e8] sm:$0xff]   ;;  %v3044_v62 = vld [vmem:[#allocation5 + $0x170] sm:$0xff]   ;;  %v3048_v2 = vld [vmem:[#allocation5 + $0x178] sm:$0xff]  }
  0x4a   :  { %2685 = vmatpush3.bf16.msra.mxu1 %v3003_v19  ;;  %v3043_v61 = vld [vmem:[#allocation5 + $0x1a8] sm:$0xff]   ;;  %v3045_v63 = vld [vmem:[#allocation5 + $0x130] sm:$0xff]   ;;  %v3049_v3 = vld [vmem:[#allocation5 + $0x138] sm:$0xff]  }
  0x4b   :  { %2686 = vmatprep.subr.bf16.mxu1 %v3006_v22  ;;  %v3046_v0 = vld [vmem:[#allocation5 + $0x1f0] sm:$0xff]   ;;  %v3050_v4 = vld [vmem:[#allocation5 + $0x1f8] sm:$0xff]   ;;  %v3054_v9 = vld [vmem:[#allocation5 + $0x240] sm:$0xff]  }
  0x4c   :  { %2665 = vmatpush3.bf16.msra.mxu0 %v3005_v21  ;;  %v3047_v1 = vld [vmem:[#allocation5 + $0x1b0] sm:$0xff]   ;;  %v3053_v8 = vld [vmem:[#allocation5 + $0x1b8] sm:$0xff]   ;;  %v3057_v13 = vld [vmem:[#allocation5 + $0x200] sm:$0xff]  }
  0x4d   :  { %2666 = vmatprep.subr.bf16.mxu0 %v3008_v24  ;;  %v63_v5 = vld [vmem:[#allocation2 + $0x10] sm:$0xff]  ;;  %v64_v10 = vld [vmem:[#allocation2 + $0x18] sm:$0xff]  ;;  %v3058_v14 = vld [vmem:[#allocation5 + $0x2c0] sm:$0xff]  }
  0x4e   :  { %2687 = vmatpush3.bf16.msra.mxu1 %v3007_v23  ;;  %v2424_v6 = vcombine.low %v63_v5, %v63_v5  ;;  %v2425_v7 = vcombine.high %v63_v5, %v63_v5  ;;  %v2426_v11 = vcombine.low %v64_v10, %v64_v10  ;;  %v2427_v12 = vcombine.high %v64_v10, %v64_v10  ;;  %v3059_v15 = vld [vmem:[#allocation5 + $0x280] sm:$0xff]   ;;  %v3060_v16 = vld [vmem:[#allocation5 + $0x248] sm:$0xff]   ;;  %v3064_v20 = vld [vmem:[#allocation5 + $0x250] sm:$0xff]  }
  0x4f   :  { %2688 = vmatprep.subr.bf16.mxu1 %v3010_v26  ;;  %v3061_v17 = vld [vmem:[#allocation5 + $0x208] sm:$0xff]   ;;  %v3065_v21 = vld [vmem:[#allocation5 + $0x210] sm:$0xff]   ;;  %v3068_v24 = vld [vmem:[#allocation5 + $0x258] sm:$0xff]  }
  0x50   :  { %2667 = vmatpush3.bf16.msra.mxu0 %v3009_v25  ;;  %v3062_v18 = vld [vmem:[#allocation5 + $0x2c8] sm:$0xff]   ;;  %v3066_v22 = vld [vmem:[#allocation5 + $0x2d0] sm:$0xff]   ;;  %v3069_v25 = vld [vmem:[#allocation5 + $0x218] sm:$0xff]  }
  0x51   :  { %2668 = vmatprep.subr.bf16.mxu0 %v3012_v28  ;;  %v3063_v19 = vld [vmem:[#allocation5 + $0x288] sm:$0xff]   ;;  %v3067_v23 = vld [vmem:[#allocation5 + $0x290] sm:$0xff]   ;;  %v3070_v26 = vld [vmem:[#allocation5 + $0x2d8] sm:$0xff]  }
  0x52   :  { %2689 = vmatpush3.bf16.msra.mxu1 %v3011_v27  ;;  %v3071_v27 = vld [vmem:[#allocation5 + $0x298] sm:$0xff]   ;;  %v3072_v28 = vld [vmem:[#allocation5 + $0x260] sm:$0xff]   ;;  %v3077_v33 = vld [vmem:[#allocation5 + $0x228] sm:$0xff]  }
  0x53   :  { %2690 = vmatprep.subr.bf16.mxu1 %v3014_v30  ;;  %v3074_v30 = vld [vmem:[#allocation5 + $0x2e0] sm:$0xff]   ;;  %v3080_v36 = vld [vmem:[#allocation5 + $0x270] sm:$0xff]  }
  0x54   :  { %2669 = vmatpush3.bf16.msra.mxu0 %v3013_v29  ;;  %v3073_v29 = vld [vmem:[#allocation5 + $0x220] sm:$0xff]   ;;  %v3082_v38 = vld [vmem:[#allocation5 + $0x2f0] sm:$0xff]  }
  0x55   :  { %2698 = vmatprep.subr.bf16.mxu0 %v3018_v35  ;;  %v3075_v31 = vld [vmem:[#allocation5 + $0x2a0] sm:$0xff]   ;;  %v3079_v35 = vld [vmem:[#allocation5 + $0x2a8] sm:$0xff]   ;;  %v3116_v10 = vld [vmem:[#allocation5 + $0x370] sm:$0xff]  }
  0x56   :  { %2691 = vmatpush3.bf16.msra.mxu1 %v3017_v34  ;;  %v3078_v34 = vld [vmem:[#allocation5 + $0x2e8] sm:$0xff]   ;;  %v3111_v5 = vld [vmem:[#allocation5 + $0x3a0] sm:$0xff]  }
  0x57   :  { %1802 = vmatmul.mubr.bf16.vlgmr.msra.gmra.mrb[0].mxu0 %v2420_v32  ;;  %2720 = vmatprep.subr.bf16.mxu1 %v3022_v40  ;;  %v3076_v32 = vld [vmem:[#allocation5 + $0x268] sm:$0xff]   ;;  %v3084_v40 = vld [vmem:[#allocation5 + $0x278] sm:$0xff]  }
  0x58   :  { %2699 = vmatpush3.bf16.msra.mxu0 %v3021_v39  ;;  %1881 = vmatprep.mubr.bf16.mxu0 %v2425_v7  ;;  %v3083_v39 = vld [vmem:[#allocation5 + $0x2b0] sm:$0xff]   ;;  %v3113_v7 = vld [vmem:[#allocation5 + $0x328] sm:$0xff]  }
  0x59   :  { %1842 = vmatmul.mubr.bf16.vlgmr.msra.gmra.mrb[0].mxu1 %v2422_v37  ;;  %2700 = vmatprep.subr.bf16.mxu0 %v3024_v42  ;;  %v3081_v37 = vld [vmem:[#allocation5 + $0x230] sm:$0xff]   ;;  %v3086_v42 = vld [vmem:[#allocation5 + $0x2f8] sm:$0xff]  }
  0x5a   :  { %2721 = vmatpush3.bf16.msra.mxu1 %v3023_v41  ;;  %1921 = vmatprep.mubr.bf16.mxu1 %v2427_v12  ;;  %v3085_v41 = vld [vmem:[#allocation5 + $0x238] sm:$0xff]   ;;  %v3118_v12 = vld [vmem:[#allocation5 + $0x3f0] sm:$0xff]  }
  0x5b   :  { %2722 = vmatprep.subr.bf16.mxu1 %v3026_v44 }
  0x5c   :  { %2701 = vmatpush3.bf16.msra.mxu0 %v3025_v43  ;;  %v65_v43 = vld [vmem:[#allocation2 + $0x20] sm:$0xff] }
  0x5d   :  { %2702 = vmatprep.subr.bf16.mxu0 %v3028_v46  ;;  %v2428_v44 = vcombine.low %v65_v43, %v65_v43  ;;  %v3089_v46 = vld [vmem:[#allocation5 + $0x2b8] sm:$0xff]  }
  0x5e   :  { %2723 = vmatpush3.bf16.msra.mxu1 %v3027_v45  ;;  %v2429_v45 = vcombine.high %v65_v43, %v65_v43  ;;  %v3147_v43 = vld [vmem:[#allocation5 + $0x4a0] sm:$0xff]  }
  0x5f   :  { %2724 = vmatprep.subr.bf16.mxu1 %v3030_v48  ;;  %v66_v48 = vld [vmem:[#allocation2 + $0x28] sm:$0xff] }
  0x60   :  { %2703 = vmatpush3.bf16.msra.mxu0 %v3029_v47  ;;  %v3090_v47 = vld [vmem:[#allocation5 + $0x340] sm:$0xff]  }
  0x61   :  { %2704 = vmatprep.subr.bf16.mxu0 %v3032_v50  ;;  %v2431_v50 = vcombine.high %v66_v48, %v66_v48 }
  0x62   :  { %2725 = vmatpush3.bf16.msra.mxu1 %v3031_v49  ;;  %v2430_v49 = vcombine.low %v66_v48, %v66_v48  ;;  %v3152_v48 = vld [vmem:[#allocation5 + $0x470] sm:$0xff]  }
  0x63   :  { %2726 = vmatprep.subr.bf16.mxu1 %v3034_v52  ;;  %v3094_v52 = vld [vmem:[#allocation5 + $0x3c0] sm:$0xff]  }
  0x64   :  { %2705 = vmatpush3.bf16.msra.mxu0 %v3033_v51  ;;  %v3093_v51 = vld [vmem:[#allocation5 + $0x300] sm:$0xff]  }
  0x65   :  { %2706 = vmatprep.subr.bf16.mxu0 %v3036_v54  ;;  %v3096_v54 = vld [vmem:[#allocation5 + $0x348] sm:$0xff]  }
  0x66   :  { %2727 = vmatpush3.bf16.msra.mxu1 %v3035_v53  ;;  %v3095_v53 = vld [vmem:[#allocation5 + $0x380] sm:$0xff]  }
  0x67   :  { %2728 = vmatprep.subr.bf16.mxu1 %v3038_v56  ;;  %v3098_v56 = vld [vmem:[#allocation5 + $0x3c8] sm:$0xff]  }
  0x68   :  { %2707 = vmatpush3.bf16.msra.mxu0 %v3037_v55  ;;  %v3097_v55 = vld [vmem:[#allocation5 + $0x308] sm:$0xff]  }
  0x69   :  { %2708 = vmatprep.subr.bf16.mxu0 %v3040_v58  ;;  %v3100_v58 = vld [vmem:[#allocation5 + $0x350] sm:$0xff]  }
  0x6a   :  { %2729 = vmatpush3.bf16.msra.mxu1 %v3039_v57  ;;  %v3099_v57 = vld [vmem:[#allocation5 + $0x388] sm:$0xff]  }
  0x6b   :  { %2730 = vmatprep.subr.bf16.mxu1 %v3042_v60  ;;  %v3102_v60 = vld [vmem:[#allocation5 + $0x3d0] sm:$0xff]  }
  0x6c   :  { %2709 = vmatpush3.bf16.msra.mxu0 %v3041_v59  ;;  %v3101_v59 = vld [vmem:[#allocation5 + $0x310] sm:$0xff]  }
  0x6d   :  { %2710 = vmatprep.subr.bf16.mxu0 %v3044_v62  ;;  %v3104_v62 = vld [vmem:[#allocation5 + $0x358] sm:$0xff]  }
  0x6e   :  { %2731 = vmatpush3.bf16.msra.mxu1 %v3043_v61  ;;  %v3103_v61 = vld [vmem:[#allocation5 + $0x390] sm:$0xff]  }
  0x6f   :  { %2732 = vmatprep.subr.bf16.mxu1 %v3046_v0  ;;  %v3106_v0 = vld [vmem:[#allocation5 + $0x3d8] sm:$0xff]  }
  0x70   :  { %2711 = vmatpush3.bf16.msra.mxu0 %v3045_v63  ;;  %v3105_v63 = vld [vmem:[#allocation5 + $0x318] sm:$0xff]  }
  0x71   :  { %2712 = vmatprep.subr.bf16.mxu0 %v3048_v2  ;;  %v3108_v2 = vld [vmem:[#allocation5 + $0x360] sm:$0xff]  }
  0x72   :  { %2733 = vmatpush3.bf16.msra.mxu1 %v3047_v1  ;;  %v3107_v1 = vld [vmem:[#allocation5 + $0x398] sm:$0xff]  }
  0x73   :  { %2734 = vmatprep.subr.bf16.mxu1 %v3050_v4  ;;  %v3110_v4 = vld [vmem:[#allocation5 + $0x3e0] sm:$0xff]  }
  0x74   :  { %2713 = vmatpush3.bf16.msra.mxu0 %v3049_v3  ;;  %v3109_v3 = vld [vmem:[#allocation5 + $0x320] sm:$0xff]  }
  0x75   :  { %2742 = vmatprep.subr.bf16.mxu0 %v3054_v9  ;;  %v3115_v9 = vld [vmem:[#allocation5 + $0x3a8] sm:$0xff]  }
  0x76   :  { %2735 = vmatpush3.bf16.msra.mxu1 %v3053_v8  ;;  %v3114_v8 = vld [vmem:[#allocation5 + $0x3e8] sm:$0xff]  }
  0x77   :  { %1882 = vmatmul.mubr.bf16.vlgmr.msra.gmra.mrb[4].mxu0 %v2424_v6  ;;  %2764 = vmatprep.subr.bf16.mxu1 %v3058_v14  ;;  %v3112_v6 = vld [vmem:[#allocation5 + $0x368] sm:$0xff]   ;;  %v3120_v14 = vld [vmem:[#allocation5 + $0x378] sm:$0xff]  }
  0x78   :  { %2743 = vmatpush3.bf16.msra.mxu0 %v3057_v13  ;;  %1961 = vmatprep.mubr.bf16.mxu0 %v2429_v45  ;;  %v3119_v13 = vld [vmem:[#allocation5 + $0x3b0] sm:$0xff]   ;;  %v3149_v45 = vld [vmem:[#allocation5 + $0x428] sm:$0xff]  }
  0x79   :  { %1922 = vmatmul.mubr.bf16.vlgmr.msra.gmra.mrb[4].mxu1 %v2426_v11  ;;  %2744 = vmatprep.subr.bf16.mxu0 %v3060_v16  ;;  %v3117_v11 = vld [vmem:[#allocation5 + $0x330] sm:$0xff]   ;;  %v3122_v16 = vld [vmem:[#allocation5 + $0x3f8] sm:$0xff]  }
  0x7a   :  { %2765 = vmatpush3.bf16.msra.mxu1 %v3059_v15  ;;  %2001 = vmatprep.mubr.bf16.mxu1 %v2431_v50  ;;  %v3121_v15 = vld [vmem:[#allocation5 + $0x338] sm:$0xff]   ;;  %v3154_v50 = vld [vmem:[#allocation5 + $0x4f0] sm:$0xff]  }
  0x7b   :  { %2766 = vmatprep.subr.bf16.mxu1 %v3062_v18 }
  0x7c   :  { %2745 = vmatpush3.bf16.msra.mxu0 %v3061_v17  ;;  %v67_v17 = vld [vmem:[#allocation2 + $0x30] sm:$0xff] }
  0x7d   :  { %2746 = vmatprep.subr.bf16.mxu0 %v3064_v20  ;;  %v2432_v18 = vcombine.low %v67_v17, %v67_v17  ;;  %v3125_v20 = vld [vmem:[#allocation5 + $0x3b8] sm:$0xff]  }
  0x7e   :  { %2767 = vmatpush3.bf16.msra.mxu1 %v3063_v19  ;;  %v2433_v19 = vcombine.high %v67_v17, %v67_v17  ;;  %v3183_v17 = vld [vmem:[#allocation5 + $0x5a0] sm:$0xff]  }
  0x7f   :  { %2768 = vmatprep.subr.bf16.mxu1 %v3066_v22  ;;  %v68_v22 = vld [vmem:[#allocation2 + $0x38] sm:$0xff] }
  0x80   :  { %2747 = vmatpush3.bf16.msra.mxu0 %v3065_v21  ;;  %v3126_v21 = vld [vmem:[#allocation5 + $0x440] sm:$0xff]  }
  0x81   :  { %2748 = vmatprep.subr.bf16.mxu0 %v3068_v24  ;;  %v2435_v24 = vcombine.high %v68_v22, %v68_v22 }
  0x82   :  { %2769 = vmatpush3.bf16.msra.mxu1 %v3067_v23  ;;  %v2434_v23 = vcombine.low %v68_v22, %v68_v22  ;;  %v3188_v22 = vld [vmem:[#allocation5 + $0x570] sm:$0xff]  }
  0x83   :  { %2770 = vmatprep.subr.bf16.mxu1 %v3070_v26  ;;  %v3130_v26 = vld [vmem:[#allocation5 + $0x4c0] sm:$0xff]  }
  0x84   :  { %2749 = vmatpush3.bf16.msra.mxu0 %v3069_v25  ;;  %v3129_v25 = vld [vmem:[#allocation5 + $0x400] sm:$0xff]  }
  0x85   :  { %2750 = vmatprep.subr.bf16.mxu0 %v3072_v28  ;;  %v3132_v28 = vld [vmem:[#allocation5 + $0x448] sm:$0xff]  }
  0x86   :  { %2771 = vmatpush3.bf16.msra.mxu1 %v3071_v27  ;;  %v3131_v27 = vld [vmem:[#allocation5 + $0x480] sm:$0xff]  }
  0x87   :  { %2772 = vmatprep.subr.bf16.mxu1 %v3074_v30  ;;  %v3134_v30 = vld [vmem:[#allocation5 + $0x4c8] sm:$0xff]  }
  0x88   :  { %2751 = vmatpush3.bf16.msra.mxu0 %v3073_v29  ;;  %v3133_v29 = vld [vmem:[#allocation5 + $0x408] sm:$0xff]  }
  0x89   :  { %2752 = vmatprep.subr.bf16.mxu0 %v3076_v32  ;;  %v3136_v32 = vld [vmem:[#allocation5 + $0x450] sm:$0xff]  }
  0x8a   :  { %2773 = vmatpush3.bf16.msra.mxu1 %v3075_v31  ;;  %v3135_v31 = vld [vmem:[#allocation5 + $0x488] sm:$0xff]  }
  0x8b   :  { %2774 = vmatprep.subr.bf16.mxu1 %v3078_v34  ;;  %v3138_v34 = vld [vmem:[#allocation5 + $0x4d0] sm:$0xff]  }
  0x8c   :  { %2753 = vmatpush3.bf16.msra.mxu0 %v3077_v33  ;;  %v3137_v33 = vld [vmem:[#allocation5 + $0x410] sm:$0xff]  }
  0x8d   :  { %2754 = vmatprep.subr.bf16.mxu0 %v3080_v36  ;;  %v3140_v36 = vld [vmem:[#allocation5 + $0x458] sm:$0xff]  }
  0x8e   :  { %2775 = vmatpush3.bf16.msra.mxu1 %v3079_v35  ;;  %v3139_v35 = vld [vmem:[#allocation5 + $0x490] sm:$0xff]  }
  0x8f   :  { %2776 = vmatprep.subr.bf16.mxu1 %v3082_v38  ;;  %v3142_v38 = vld [vmem:[#allocation5 + $0x4d8] sm:$0xff]  }
  0x90   :  { %2755 = vmatpush3.bf16.msra.mxu0 %v3081_v37  ;;  %v3141_v37 = vld [vmem:[#allocation5 + $0x418] sm:$0xff]  }
  0x91   :  { %2756 = vmatprep.subr.bf16.mxu0 %v3084_v40  ;;  %v3144_v40 = vld [vmem:[#allocation5 + $0x460] sm:$0xff]  }
  0x92   :  { %2777 = vmatpush3.bf16.msra.mxu1 %v3083_v39  ;;  %v3143_v39 = vld [vmem:[#allocation5 + $0x498] sm:$0xff]  }
  0x93   :  { %2778 = vmatprep.subr.bf16.mxu1 %v3086_v42  ;;  %v3146_v42 = vld [vmem:[#allocation5 + $0x4e0] sm:$0xff]  }
  0x94   :  { %2757 = vmatpush3.bf16.msra.mxu0 %v3085_v41  ;;  %v3145_v41 = vld [vmem:[#allocation5 + $0x420] sm:$0xff]  }
  0x95   :  { %2786 = vmatprep.subr.bf16.mxu0 %v3090_v47  ;;  %v3151_v47 = vld [vmem:[#allocation5 + $0x4a8] sm:$0xff]  }
  0x96   :  { %2779 = vmatpush3.bf16.msra.mxu1 %v3089_v46  ;;  %v3150_v46 = vld [vmem:[#allocation5 + $0x4e8] sm:$0xff]  }
  0x97   :  { %1962 = vmatmul.mubr.bf16.vlgmr.msra.gmra.mrb[8].mxu0 %v2428_v44  ;;  %2808 = vmatprep.subr.bf16.mxu1 %v3094_v52  ;;  %v3148_v44 = vld [vmem:[#allocation5 + $0x468] sm:$0xff]   ;;  %v3156_v52 = vld [vmem:[#allocation5 + $0x478] sm:$0xff]  }
  0x98   :  { %2787 = vmatpush3.bf16.msra.mxu0 %v3093_v51  ;;  %2041 = vmatprep.mubr.bf16.mxu0 %v2433_v19  ;;  %v3155_v51 = vld [vmem:[#allocation5 + $0x4b0] sm:$0xff]   ;;  %v3185_v19 = vld [vmem:[#allocation5 + $0x528] sm:$0xff]  }
  0x99   :  { %2002 = vmatmul.mubr.bf16.vlgmr.msra.gmra.mrb[8].mxu1 %v2430_v49  ;;  %2788 = vmatprep.subr.bf16.mxu0 %v3096_v54  ;;  %v3153_v49 = vld [vmem:[#allocation5 + $0x430] sm:$0xff]   ;;  %v3158_v54 = vld [vmem:[#allocation5 + $0x4f8] sm:$0xff]  }
  0x9a   :  { %2809 = vmatpush3.bf16.msra.mxu1 %v3095_v53  ;;  %2081 = vmatprep.mubr.bf16.mxu1 %v2435_v24  ;;  %v3157_v53 = vld [vmem:[#allocation5 + $0x438] sm:$0xff]   ;;  %v3190_v24 = vld [vmem:[#allocation5 + $0x5f0] sm:$0xff]  }
  0x9b   :  { %2810 = vmatprep.subr.bf16.mxu1 %v3098_v56 }
  0x9c   :  { %2789 = vmatpush3.bf16.msra.mxu0 %v3097_v55  ;;  %v69_v55 = vld [vmem:[#allocation2 + $0x40] sm:$0xff] }
  0x9d   :  { %2790 = vmatprep.subr.bf16.mxu0 %v3100_v58  ;;  %v2436_v56 = vcombine.low %v69_v55, %v69_v55  ;;  %v3161_v58 = vld [vmem:[#allocation5 + $0x4b8] sm:$0xff]  }
  0x9e   :  { %2811 = vmatpush3.bf16.msra.mxu1 %v3099_v57  ;;  %v2437_v57 = vcombine.high %v69_v55, %v69_v55 }
  0x9f   :  { %2812 = vmatprep.subr.bf16.mxu1 %v3102_v60  ;;  %v70_v60 = vld [vmem:[#allocation2 + $0x48] sm:$0xff] }
  0xa0   :  { %2791 = vmatpush3.bf16.msra.mxu0 %v3101_v59  ;;  %v3162_v59 = vld [vmem:[#allocation5 + $0x540] sm:$0xff]  }
  0xa1   :  { %2792 = vmatprep.subr.bf16.mxu0 %v3104_v62  ;;  %v2439_v62 = vcombine.high %v70_v60, %v70_v60 }
  0xa2   :  { %2813 = vmatpush3.bf16.msra.mxu1 %v3103_v61  ;;  %v2438_v61 = vcombine.low %v70_v60, %v70_v60 }
  0xa3   :  { %2814 = vmatprep.subr.bf16.mxu1 %v3106_v0  ;;  %v3166_v0 = vld [vmem:[#allocation5 + $0x5c0] sm:$0xff]  }
  0xa4   :  { %2793 = vmatpush3.bf16.msra.mxu0 %v3105_v63  ;;  %v3165_v63 = vld [vmem:[#allocation5 + $0x500] sm:$0xff]  }
  0xa5   :  { %2794 = vmatprep.subr.bf16.mxu0 %v3108_v2  ;;  %v3168_v2 = vld [vmem:[#allocation5 + $0x548] sm:$0xff]  }
  0xa6   :  { %2815 = vmatpush3.bf16.msra.mxu1 %v3107_v1  ;;  %v3167_v1 = vld [vmem:[#allocation5 + $0x580] sm:$0xff]  }
  0xa7   :  { %2816 = vmatprep.subr.bf16.mxu1 %v3110_v4  ;;  %v3170_v4 = vld [vmem:[#allocation5 + $0x5c8] sm:$0xff]  }
  0xa8   :  { %2795 = vmatpush3.bf16.msra.mxu0 %v3109_v3  ;;  %v3169_v3 = vld [vmem:[#allocation5 + $0x508] sm:$0xff]  }
  0xa9   :  { %2796 = vmatprep.subr.bf16.mxu0 %v3112_v6  ;;  %v3172_v6 = vld [vmem:[#allocation5 + $0x550] sm:$0xff]  }
  0xaa   :  { %2817 = vmatpush3.bf16.msra.mxu1 %v3111_v5  ;;  %v3171_v5 = vld [vmem:[#allocation5 + $0x588] sm:$0xff]  }
  0xab   :  { %2818 = vmatprep.subr.bf16.mxu1 %v3114_v8  ;;  %v3174_v8 = vld [vmem:[#allocation5 + $0x5d0] sm:$0xff]  }
  0xac   :  { %2797 = vmatpush3.bf16.msra.mxu0 %v3113_v7  ;;  %v3173_v7 = vld [vmem:[#allocation5 + $0x510] sm:$0xff]  }
  0xad   :  { %2798 = vmatprep.subr.bf16.mxu0 %v3116_v10  ;;  %v3176_v10 = vld [vmem:[#allocation5 + $0x558] sm:$0xff]  }
  0xae   :  { %2819 = vmatpush3.bf16.msra.mxu1 %v3115_v9  ;;  %v3175_v9 = vld [vmem:[#allocation5 + $0x590] sm:$0xff]  }
  0xaf   :  { %2820 = vmatprep.subr.bf16.mxu1 %v3118_v12  ;;  %v3178_v12 = vld [vmem:[#allocation5 + $0x5d8] sm:$0xff]  }
  0xb0   :  { %2799 = vmatpush3.bf16.msra.mxu0 %v3117_v11  ;;  %v3177_v11 = vld [vmem:[#allocation5 + $0x518] sm:$0xff]  }
  0xb1   :  { %2800 = vmatprep.subr.bf16.mxu0 %v3120_v14  ;;  %v3180_v14 = vld [vmem:[#allocation5 + $0x560] sm:$0xff]  }
  0xb2   :  { %2821 = vmatpush3.bf16.msra.mxu1 %v3119_v13  ;;  %v3179_v13 = vld [vmem:[#allocation5 + $0x598] sm:$0xff]  }
  0xb3   :  { %2822 = vmatprep.subr.bf16.mxu1 %v3122_v16  ;;  %v3182_v16 = vld [vmem:[#allocation5 + $0x5e0] sm:$0xff]  }
  0xb4   :  { %2801 = vmatpush3.bf16.msra.mxu0 %v3121_v15  ;;  %v3181_v15 = vld [vmem:[#allocation5 + $0x520] sm:$0xff]  }
  0xb5   :  { %2830 = vmatprep.subr.bf16.mxu0 %v3126_v21  ;;  %v3187_v21 = vld [vmem:[#allocation5 + $0x5a8] sm:$0xff]  }
  0xb6   :  { %2823 = vmatpush3.bf16.msra.mxu1 %v3125_v20  ;;  %v3186_v20 = vld [vmem:[#allocation5 + $0x5e8] sm:$0xff]  }
  0xb7   :  { %2042 = vmatmul.mubr.bf16.vlgmr.msra.gmra.mrb[12].mxu0 %v2432_v18  ;;  %2852 = vmatprep.subr.bf16.mxu1 %v3130_v26  ;;  %v3184_v18 = vld [vmem:[#allocation5 + $0x568] sm:$0xff]   ;;  %v3192_v26 = vld [vmem:[#allocation5 + $0x578] sm:$0xff]  }
  0xb8   :  { %2831 = vmatpush3.bf16.msra.mxu0 %v3129_v25  ;;  %2121 = vmatprep.mubr.bf16.mxu0 %v2437_v57  ;;  %v3191_v25 = vld [vmem:[#allocation5 + $0x5b0] sm:$0xff]  }
  0xb9   :  { %2082 = vmatmul.mubr.bf16.vlgmr.msra.gmra.mrb[12].mxu1 %v2434_v23  ;;  %2832 = vmatprep.subr.bf16.mxu0 %v3132_v28  ;;  %v3189_v23 = vld [vmem:[#allocation5 + $0x530] sm:$0xff]   ;;  %v3194_v28 = vld [vmem:[#allocation5 + $0x5f8] sm:$0xff]  }
  0xba   :  { %2853 = vmatpush3.bf16.msra.mxu1 %v3131_v27  ;;  %2161 = vmatprep.mubr.bf16.mxu1 %v2439_v62  ;;  %v3193_v27 = vld [vmem:[#allocation5 + $0x538] sm:$0xff]  }
  0xbb   :  { %2854 = vmatprep.subr.bf16.mxu1 %v3134_v30 }
  0xbc   :  { %2833 = vmatpush3.bf16.msra.mxu0 %v3133_v29  ;;  %v71_v29 = vld [vmem:[#allocation2 + $0x50] sm:$0xff] }
  0xbd   :  { %2834 = vmatprep.subr.bf16.mxu0 %v3136_v32  ;;  %v2440_v30 = vcombine.low %v71_v29, %v71_v29  ;;  %v3197_v32 = vld [vmem:[#allocation5 + $0x5b8] sm:$0xff]  }
  0xbe   :  { %2855 = vmatpush3.bf16.msra.mxu1 %v3135_v31  ;;  %v2441_v31 = vcombine.high %v71_v29, %v71_v29 }
  0xbf   :  { %2856 = vmatprep.subr.bf16.mxu1 %v3138_v34  ;;  %v3316_v34 = vmov 0.0  }
  0xc0   :  { %2835 = vmatpush3.bf16.msra.mxu0 %v3137_v33  ;;  %v72_v33 = vld [vmem:[#allocation2 + $0x58] sm:$0xff] }
  0xc1   :  { %2836 = vmatprep.subr.bf16.mxu0 %v3140_v36  ;;  %v2443_v36 = vcombine.high %v72_v33, %v72_v33 }
  0xc2   :  { %2857 = vmatpush3.bf16.msra.mxu1 %v3139_v35  ;;  %v2442_v35 = vcombine.low %v72_v33, %v72_v33 }
  0xc3   :  { %2858 = vmatprep.subr.bf16.mxu1 %v3142_v38  ;;  %v3201_v38 = vld [vmem:[#allocation5 + $0x608] sm:$0xff]  }
  0xc4   :  { %2837 = vmatpush3.bf16.msra.mxu0 %v3141_v37  ;;  %v3200_v37 = vld [vmem:[#allocation5 + $0x600] sm:$0xff]  }
  0xc5   :  { %2838 = vmatprep.subr.bf16.mxu0 %v3144_v40  ;;  %v3203_v40 = vld [vmem:[#allocation5 + $0x618] sm:$0xff]  }
  0xc6   :  { %2859 = vmatpush3.bf16.msra.mxu1 %v3143_v39  ;;  %v3202_v39 = vld [vmem:[#allocation5 + $0x610] sm:$0xff]  }
  0xc7   :  { %2860 = vmatprep.subr.bf16.mxu1 %v3146_v42  ;;  %v3205_v42 = vld [vmem:[#allocation5 + $0x628] sm:$0xff]  }
  0xc8   :  { %2839 = vmatpush3.bf16.msra.mxu0 %v3145_v41  ;;  %v3204_v41 = vld [vmem:[#allocation5 + $0x620] sm:$0xff]  }
  0xc9   :  { %2840 = vmatprep.subr.bf16.mxu0 %v3148_v44  ;;  %v3207_v44 = vld [vmem:[#allocation5 + $0x638] sm:$0xff]  }
  0xca   :  { %2861 = vmatpush3.bf16.msra.mxu1 %v3147_v43  ;;  %v3206_v43 = vld [vmem:[#allocation5 + $0x630] sm:$0xff]  }
  0xcb   :  { %2862 = vmatprep.subr.bf16.mxu1 %v3150_v46 }
  0xcc   :  { %2841 = vmatpush3.bf16.msra.mxu0 %v3149_v45  ;;  %v3208_v45 = vld [vmem:[#allocation2 + $0x60] ss:$0 sps:$4 sm:$0xff]  }
  0xcd   :  { %2842 = vmatprep.subr.bf16.mxu0 %v3152_v48 }
  0xce   :  { %2863 = vmatpush3.bf16.msra.mxu1 %v3151_v47  ;;  %v2419_v47 = vld [vmem:[%s3429_s2] ss:$0 sm:$0xff] }
  0xcf   :  { %2864 = vmatprep.subr.bf16.mxu1 %v3154_v50 }
  0xd0   :  { %2843 = vmatpush3.bf16.msra.mxu0 %v3153_v49 }
  0xd1   :  { %2844 = vmatprep.subr.bf16.mxu0 %v3156_v52 }
  0xd2   :  { %2865 = vmatpush3.bf16.msra.mxu1 %v3155_v51 }
  0xd3   :  { %2866 = vmatprep.subr.bf16.mxu1 %v3158_v54 }
  0xd4   :  { %2845 = vmatpush3.bf16.msra.mxu0 %v3157_v53 }
  0xd5   :  { %2874 = vmatprep.subr.bf16.mxu0 %v3162_v59 }
  0xd6   :  { %2867 = vmatpush3.bf16.msra.mxu1 %v3161_v58 }
  0xd7   :  { %2122 = vmatmul.mubr.bf16.vlgmr.msra.gmra.mrb[16].mxu0 %v2436_v56  ;;  %2896 = vmatprep.subr.bf16.mxu1 %v3166_v0 }
  0xd8   :  { %2875 = vmatpush3.bf16.msra.mxu0 %v3165_v63  ;;  %2201 = vmatprep.mubr.bf16.mxu0 %v2441_v31 }
  0xd9   :  { %2162 = vmatmul.mubr.bf16.vlgmr.msra.gmra.mrb[16].mxu1 %v2438_v61  ;;  %2876 = vmatprep.subr.bf16.mxu0 %v3168_v2 }
  0xda   :  { %2897 = vmatpush3.bf16.msra.mxu1 %v3167_v1  ;;  %2241 = vmatprep.mubr.bf16.mxu1 %v2443_v36 }
  0xdb   :  { %2898 = vmatprep.subr.bf16.mxu1 %v3170_v4 }
  0xdc   :  { %2877 = vmatpush3.bf16.msra.mxu0 %v3169_v3 }
  0xdd   :  { %2878 = vmatprep.subr.bf16.mxu0 %v3172_v6 }
  0xde   :  { %2899 = vmatpush3.bf16.msra.mxu1 %v3171_v5 }
  0xdf   :  { %2900 = vmatprep.subr.bf16.mxu1 %v3174_v8  ;;  %v3210_v8 = vld [vmem:[#allocation7 + $0x8] sm:$0xff]  }
  0xe0   :  { %2879 = vmatpush3.bf16.msra.mxu0 %v3173_v7  ;;  %v3209_v7 = vld [vmem:[#allocation7] sm:$0xff]  }
  0xe1   :  { %2880 = vmatprep.subr.bf16.mxu0 %v3176_v10  ;;  %v3212_v10 = vld [vmem:[#allocation7 + $0x18] sm:$0xff]  }
  0xe2   :  { %2901 = vmatpush3.bf16.msra.mxu1 %v3175_v9  ;;  %v3211_v9 = vld [vmem:[#allocation7 + $0x10] sm:$0xff]  }
  0xe3   :  { %2902 = vmatprep.subr.bf16.mxu1 %v3178_v12  ;;  %v3214_v12 = vld [vmem:[#allocation7 + $0x28] sm:$0xff]  }
  0xe4   :  { %2881 = vmatpush3.bf16.msra.mxu0 %v3177_v11  ;;  %v3213_v11 = vld [vmem:[#allocation7 + $0x20] sm:$0xff]  }
  0xe5   :  { %2882 = vmatprep.subr.bf16.mxu0 %v3180_v14  ;;  %v3215_v14 = vld [vmem:[#allocation7 + $0x30] sm:$0xff]  }
  0xe6   :  { %2903 = vmatpush3.bf16.msra.mxu1 %v3179_v13 }
  0xe7   :  { %2904 = vmatprep.subr.bf16.mxu1 %v3182_v16 }
  0xe8   :  { %2883 = vmatpush3.bf16.msra.mxu0 %v3181_v15 }
  0xe9   :  { %2884 = vmatprep.subr.bf16.mxu0 %v3184_v18 }
  0xea   :  { %2905 = vmatpush3.bf16.msra.mxu1 %v3183_v17 }
  0xeb   :  { %2906 = vmatprep.subr.bf16.mxu1 %v3186_v20 }
  0xec   :  { %2885 = vmatpush3.bf16.msra.mxu0 %v3185_v19 }
  0xed   :  { %2886 = vmatprep.subr.bf16.mxu0 %v3188_v22 }
  0xee   :  { %2907 = vmatpush3.bf16.msra.mxu1 %v3187_v21 }
  0xef   :  { %2908 = vmatprep.subr.bf16.mxu1 %v3190_v24  ;;  %v3216_v24 = vld [vmem:[#allocation7 + $0x38] sm:$0xff]  }
  0xf0   :  { %2887 = vmatpush3.bf16.msra.mxu0 %v3189_v23 }
  0xf1   :  { %2888 = vmatprep.subr.bf16.mxu0 %v3192_v26 }
  0xf2   :  { %2909 = vmatpush3.bf16.msra.mxu1 %v3191_v25 }
  0xf3   :  { %2910 = vmatprep.subr.bf16.mxu1 %v3194_v28 }
  0xf4   :  { %2889 = vmatpush3.bf16.msra.mxu0 %v3193_v27 }
  0xf5   :  { %2936 = vmatprep.subr.bf16.mxu0 %v3316_v34 }
  0xf6   :  { %2911 = vmatpush3.bf16.msra.mxu1 %v3197_v32 }
  0xf7   :  { %2202 = vmatmul.mubr.bf16.vlgmr.msra.gmra.mrb[20].mxu0 %v2440_v30  ;;  %2956 = vmatprep.subr.bf16.mxu1 %v3316_v34 }
  0xf8   :  { %2937 = vmatpush3.bf16.msra.mxu0 %v3200_v37  ;;  %2952 = vmatprep.mubr.msk.bf16.mxu0 %vm3317_vm0, %v3316_v34 }
  0xf9   :  { %2242 = vmatmul.mubr.bf16.vlgmr.msra.gmra.mrb[20].mxu1 %v2442_v35  ;;  %2938 = vmatprep.subr.bf16.mxu0 %v3316_v34 }
  0xfa   :  { %2972 = vmatprep.mubr.msk.bf16.mxu1 %vm3317_vm0, %v3316_v34  ;;  %2957 = vmatpush3.bf16.msra.mxu1 %v3209_v7 }
  0xfb   :  { %2958 = vmatprep.subr.bf16.mxu1 %v3316_v34 }
  0xfc   :  { %2939 = vmatpush3.bf16.msra.mxu0 %v3201_v38 }
  0xfd   :  { %2940 = vmatprep.subr.bf16.mxu0 %v3316_v34 }
  0xfe   :  { %2959 = vmatpush3.bf16.msra.mxu1 %v3210_v8 }
  0xff   :  { %2960 = vmatprep.subr.bf16.mxu1 %v3316_v34 }
 0x100   :  { %2941 = vmatpush3.bf16.msra.mxu0 %v3202_v39 }
 0x101   :  { %2942 = vmatprep.subr.bf16.mxu0 %v3316_v34 }
 0x102   :  { %2961 = vmatpush3.bf16.msra.mxu1 %v3211_v9 }
 0x103   :  { %2962 = vmatprep.subr.bf16.mxu1 %v3316_v34 }
 0x104   :  { %2943 = vmatpush3.bf16.msra.mxu0 %v3203_v40 }
 0x105   :  { %2944 = vmatprep.subr.bf16.mxu0 %v3316_v34 }
 0x106   :  { %2963 = vmatpush3.bf16.msra.mxu1 %v3212_v10 }
 0x107   :  { %2964 = vmatprep.subr.bf16.mxu1 %v3316_v34 }
 0x108   :  { %2945 = vmatpush3.bf16.msra.mxu0 %v3204_v41 }
 0x109   :  { %2946 = vmatprep.subr.bf16.mxu0 %v3316_v34 }
 0x10a   :  { %2965 = vmatpush3.bf16.msra.mxu1 %v3213_v11 }
 0x10b   :  { %2966 = vmatprep.subr.bf16.mxu1 %v3316_v34 }
 0x10c   :  { %2947 = vmatpush3.bf16.msra.mxu0 %v3205_v42 }
 0x10d   :  { %2948 = vmatprep.subr.bf16.mxu0 %v3316_v34 }
 0x10e   :  { %2967 = vmatpush3.bf16.msra.mxu1 %v3214_v12 }
 0x10f   :  { %2968 = vmatprep.subr.bf16.mxu1 %v3316_v34 }
 0x110   :  { %2949 = vmatpush3.bf16.msra.mxu0 %v3206_v43 }
 0x111   :  { %2950 = vmatprep.subr.bf16.mxu0 %v3316_v34 }
 0x112   :  { %2969 = vmatpush3.bf16.msra.mxu1 %v3215_v14 }
 0x113   :  { %2970 = vmatprep.subr.bf16.mxu1 %v3316_v34 }
 0x114   :  { %2951 = vmatpush3.bf16.msra.mxu0 %v3207_v44 }
 0x116   :  { %2971 = vmatpush3.bf16.msra.mxu1 %v3216_v24 }
 0x117   :  { %2953 = vmatmul.mubr.bf16.vlgmr.msra.gmra.mrb[24].mxu0 %v3208_v45 }
 0x12a   :  { %v2670_v46 = vpop.f32.mrb[0].mxu0 }
 0x12b   :  { %v2671_v48 = vpop.f32.mrb[1].mxu0 }
 0x12c   :  { %v2672_v49 = vadd.f32 %v2671_v48, %v2670_v46  ;;  %v2673_v50 = vpop.f32.mrb[2].mxu0  ;;  %v2692_v51 = vpop.f32.mrb[0].mxu1 }
 0x12d   :  { %v2674_v52 = vpop.f32.mrb[3].mxu0  ;;  %v2693_v53 = vpop.f32.mrb[1].mxu1 }
 0x12e   :  { %v1804_v54 = vadd.f32 %v2672_v49, %v2419_v47  ;;  %v2694_v55 = vadd.f32 %v2693_v53, %v2692_v51  ;;  %v2695_v56 = vpop.f32.mrb[2].mxu1 }
 0x12f   :  { %v2696_v57 = vpop.f32.mrb[3].mxu1 }
 0x130   :  { %v1844_v58 = vadd.f32 %v2694_v55, %v1804_v54 }
 0x14a   :  { %v2714_v59 = vpop.f32.mrb[4].mxu0 }
 0x14b   :  { %v2715_v60 = vpop.f32.mrb[5].mxu0 }
 0x14c   :  { %v2716_v61 = vadd.f32 %v2715_v60, %v2714_v59  ;;  %v2717_v62 = vpop.f32.mrb[6].mxu0  ;;  %v2736_v63 = vpop.f32.mrb[4].mxu1 }
 0x14d   :  { %v2718_v0 = vpop.f32.mrb[7].mxu0  ;;  %v2737_v2 = vpop.f32.mrb[5].mxu1 }
 0x14e   :  { %v1884_v1 = vadd.f32 %v2716_v61, %v1844_v58  ;;  %v2738_v3 = vadd.f32 %v2737_v2, %v2736_v63  ;;  %v2739_v4 = vpop.f32.mrb[6].mxu1 }
 0x14f   :  { %v2740_v5 = vpop.f32.mrb[7].mxu1 }
 0x150   :  { %v1924_v6 = vadd.f32 %v2738_v3, %v1884_v1 }
 0x16a   :  { %v2758_v13 = vpop.f32.mrb[8].mxu0 }
 0x16b   :  { %v2759_v15 = vpop.f32.mrb[9].mxu0 }
 0x16c   :  { %v2760_v16 = vadd.f32 %v2759_v15, %v2758_v13  ;;  %v2761_v17 = vpop.f32.mrb[10].mxu0  ;;  %v2780_v18 = vpop.f32.mrb[8].mxu1 }
 0x16d   :  { %v2762_v19 = vpop.f32.mrb[11].mxu0  ;;  %v2781_v20 = vpop.f32.mrb[9].mxu1 }
 0x16e   :  { %v1964_v21 = vadd.f32 %v2760_v16, %v1924_v6  ;;  %v2782_v22 = vadd.f32 %v2781_v20, %v2780_v18  ;;  %v2783_v23 = vpop.f32.mrb[10].mxu1  ;;  %v2645_v6 = vld [vmem:[%s3431_s4] ss:$0 sm:$0xff] }
 0x16f   :  { %v2784_v25 = vpop.f32.mrb[11].mxu1 }
 0x170   :  { %v2004_v26 = vadd.f32 %v2782_v22, %v1964_v21 }
 0x18a   :  { %v2802_v27 = vpop.f32.mrb[12].mxu0 }
 0x18b   :  { %v2803_v28 = vpop.f32.mrb[13].mxu0 }
 0x18c   :  { %v2804_v29 = vadd.f32 %v2803_v28, %v2802_v27  ;;  %v2805_v30 = vpop.f32.mrb[14].mxu0  ;;  %v2824_v31 = vpop.f32.mrb[12].mxu1 }
 0x18d   :  { %v2806_v32 = vpop.f32.mrb[15].mxu0  ;;  %v2825_v33 = vpop.f32.mrb[13].mxu1 }
 0x18e   :  { %v2044_v35 = vadd.f32 %v2804_v29, %v2004_v26  ;;  %v2826_v36 = vadd.f32 %v2825_v33, %v2824_v31  ;;  %v2827_v37 = vpop.f32.mrb[14].mxu1 }
 0x18f   :  { %v2828_v38 = vpop.f32.mrb[15].mxu1 }
 0x190   :  { %v2084_v39 = vadd.f32 %v2826_v36, %v2044_v35 }
 0x1aa   :  { %v2846_v34 = vpop.f32.mrb[16].mxu0 }
 0x1ab   :  { %v2847_v40 = vpop.f32.mrb[17].mxu0 }
 0x1ac   :  { %v2848_v41 = vadd.f32 %v2847_v40, %v2846_v34  ;;  %v2849_v42 = vpop.f32.mrb[18].mxu0  ;;  %v2868_v43 = vpop.f32.mrb[16].mxu1 }
 0x1ad   :  { %v2850_v44 = vpop.f32.mrb[19].mxu0  ;;  %v2869_v46 = vpop.f32.mrb[17].mxu1 }
 0x1ae   :  { %v2124_v45 = vadd.f32 %v2848_v41, %v2084_v39  ;;  %v2870_v47 = vadd.f32 %v2869_v46, %v2868_v43  ;;  %v2871_v48 = vpop.f32.mrb[18].mxu1 }
 0x1af   :  { %v2872_v49 = vpop.f32.mrb[19].mxu1 }
 0x1b0   :  { %v2164_v50 = vadd.f32 %v2870_v47, %v2124_v45 }
 0x1ca   :  { %v2890_v51 = vpop.f32.mrb[20].mxu0 }
 0x1cb   :  { %v2891_v52 = vpop.f32.mrb[21].mxu0 }
 0x1cc   :  { %v2892_v53 = vadd.f32 %v2891_v52, %v2890_v51  ;;  %v2893_v54 = vpop.f32.mrb[22].mxu0  ;;  %v2912_v55 = vpop.f32.mrb[20].mxu1 }
 0x1cd   :  { %v2894_v56 = vpop.f32.mrb[23].mxu0  ;;  %v2913_v57 = vpop.f32.mrb[21].mxu1 }
 0x1ce   :  { %v2204_v58 = vadd.f32 %v2892_v53, %v2164_v50  ;;  %v2914_v59 = vadd.f32 %v2913_v57, %v2912_v55  ;;  %v2915_v60 = vpop.f32.mrb[22].mxu1 }
 0x1cf   :  { %v2916_v61 = vpop.f32.mrb[23].mxu1 }
 0x1d0   :  { %v2244_v62 = vadd.f32 %v2914_v59, %v2204_v58 }
 0x1ea   :  { %v2283_v63 = vpop.f32.mrb[24].mxu0 }
 0x1eb   :  { %v2284_v0 = vadd.f32 %v2283_v63, %v2244_v62  ;;  %v2954_v1 = vpop.f32.mrb[25].mxu0 }
 0x1ec   :  { %v2286_v2 = vpop.f32.mrb[26].mxu0 }
 0x1ed   :  { %v2289_v3 = vmax.f32 %v2284_v0, 0.0  ;;  %v2955_v4 = vpop.f32.mrb[27].mxu0 }
 0x1ef   :  { %v2290_v5 = vpack.c.bf16 %v2289_v3, %v2289_v3 }
 0x1f1   :  { %2973 = vmatmul.mubr.bf16.vlgmr.msra.gmra.mrb[24].mxu1 %v2290_v5 }
 0x2c4   :  { %v2396_v7 = vpop.f32.mrb[24].mxu1 }
 0x2c5   :  { %v2397_v8 = vadd.f32 %v2645_v6, %v2396_v7  ;;  %v2974_v9 = vpop.f32.mrb[25].mxu1 }
 0x2c6   :  { %v2399_v10 = vpop.f32.mrb[26].mxu1 }
 0x2c7   :  { %2402 = vst [vmem:[#allocation8] sm:$0xff] %v2397_v8  ;;  %v2975_v11 = vpop.f32.mrb[27].mxu1 }
 0x2c8   :  { %3294 = shalt.err (!%p3291_p0)
}
 0x2c9   :  { %s3295_s4 = scalar_lea.hbm %s3432_s5, 128 }
 0x2ca   :  { %p3296_p1 = scmp.ne.s32.totalorder %s3432_s5, %s3295_s4  ;;  %p3299_p2 = scmp.lt.u32.totalorder %s3295_s4, %s3432_s5 }
 0x2cc   :  { %p3301_p3 = pnand %p3299_p2, %p3296_p1 }
 0x2ce   :  { %3304 = shalt.err (!%p3301_p3)
}
 0x2cf   :  { %2412 = dma.vmem_to_hbm [thread:$0]  %s2410_s7, 128, %s3432_s5, [#allocation4]  }
 0x2d0   :  { %3309 = dma.done.wait [#allocation4], 128  }
 0x2d1   :  { %3310 = vsyncadd [#allocation4], 4294967168 }
 0x2d2   :  { %2416 = vsyncpa [#allocation3], 1 }
 0x2d3   :  { %2417 = vsyncpa [#allocation6], 1 }
 0x2d4   :  { %2418 = vsyncpa [#allocation4], 1 }

</bundles_post_ra>
